<compile_context>
chip_gen: v6e
topology: v6e:2x2x1
jax: 0.10.0
libtpu: 0.0.40
codegen_flags: <defaults>
</compile_context>

<pallas_src>
import numpy as np
import jax
import jax.numpy as jnp
from jax.experimental import pallas as pl
from jax.experimental.pallas import tpu as pltpu

SIZE_Y = 64    # image height produced by the Linear head
SIZE_X = 128   # image width  produced by the Linear head


# ---------------------------------------------------------------------------
# Pallas kernel: Linear(3 -> 64*128) + Sigmoid + bilinear resize as matmuls,
# over a block of batch elements per grid step.
# ---------------------------------------------------------------------------
def fill_in_kernel(h_sm, w2_ref, b2_ref, ry_ref, rxT_ref, out_ref):
    blk = pl.program_id(0)
    h_out = ry_ref.shape[0]
    b_blk = out_ref.shape[0] // h_out

    # Hoist all scalar SMEM reads for this block to the top of the step.
    base = blk * b_blk
    scal = [[h_sm[base + i, k] for k in range(3)] for i in range(b_blk)]

    # Invariant VMEM loads, hoisted out of the per-image loop.
    w0 = w2_ref[0]
    w1 = w2_ref[1]
    w2 = w2_ref[2]
    bias = b2_ref[...]
    ry = ry_ref[...]

    # Per-image: K=3 Linear as VPU broadcast MACs, sigmoid, first resize matmul.
    rows = []
    for i in range(b_blk):
        img = scal[i][0] * w0 + scal[i][1] * w1 + scal[i][2] * w2 + bias   # (64,128)
        img = jax.nn.sigmoid(img)
        rows.append(jnp.dot(ry, img, preferred_element_type=jnp.float32))  # (h,128)

    # Batch the second resize matmul: one (b_blk*h, 128) @ (128, w) MXU dot.
    tmp = jnp.concatenate(rows, axis=0)                                    # (b_blk*h, 128)
    out_ref[...] = jnp.dot(tmp, rxT_ref[...], preferred_element_type=jnp.float32)


def fill_in_to_image(h_feat, W2r, b2r, Ry, RxT, *, b_blk=8):
    """h_feat:(B,3) features after the small MLP front-end -> (B, h_out, w_out)."""
    B = h_feat.shape[0]
    h_out, w_out = Ry.shape[0], RxT.shape[1]
    b_blk = min(b_blk, B)
    n_blk = pl.cdiv(B, b_blk)
    B_pad = n_blk * b_blk
    if B_pad != B:
        h_feat = jnp.pad(h_feat, ((0, B_pad - B), (0, 0)))

    out = pl.pallas_call(
        fill_in_kernel,
        out_shape=jax.ShapeDtypeStruct((B_pad * h_out, w_out), jnp.float32),
        grid=(n_blk,),
        in_specs=[
            pl.BlockSpec(memory_space=pltpu.MemorySpace.SMEM),          # h_feat (B_pad,3)
            pl.BlockSpec((3, SIZE_Y, SIZE_X), lambda i: (0, 0, 0)),     # W2r
            pl.BlockSpec((SIZE_Y, SIZE_X), lambda i: (0, 0)),           # b2r
            pl.BlockSpec((h_out, SIZE_Y), lambda i: (0, 0)),            # Ry
            pl.BlockSpec((SIZE_X, w_out), lambda i: (0, 0)),            # Rx^T
        ],
        out_specs=pl.BlockSpec((b_blk * h_out, w_out), lambda i: (i, 0)),
        compiler_params=pltpu.CompilerParams(dimension_semantics=("parallel",)),
    )(h_feat, W2r, b2r, Ry, RxT)

    return out.reshape(B_pad, h_out, w_out)[:B]


# ---------------------------------------------------------------------------
# Glue: tiny 3-feature front-end (eval-mode BatchNorm), bilinear matrices.
# ---------------------------------------------------------------------------
def front_end(x, p, eps=1e-5):
    y = (x - p["bn1_mean"]) / jnp.sqrt(p["bn1_var"] + eps) * p["bn1_gamma"] + p["bn1_beta"]
    y = y @ p["W1"].T + p["b1"]
    y = jnp.where(y >= 0, y, 0.2 * y)                  # LeakyReLU(0.2)
    y = (y - p["bn2_mean"]) / jnp.sqrt(p["bn2_var"] + eps) * p["bn2_gamma"] + p["bn2_beta"]
    return y


def bilinear_matrix(out_size, in_size):
    """PyTorch bilinear interpolation (align_corners=False) as a dense matrix."""
    scale = in_size / out_size
    o = np.arange(out_size, dtype=np.float64)
    src = np.maximum((o + 0.5) * scale - 0.5, 0.0)
    x0 = np.minimum(np.floor(src).astype(np.int64), in_size - 1)
    x1 = np.minimum(x0 + 1, in_size - 1)
    w1 = src - x0
    w0 = 1.0 - w1
    M = np.zeros((out_size, in_size), dtype=np.float32)
    rows = np.arange(out_size)
    M[rows, x0] += w0.astype(np.float32)
    M[rows, x1] += w1.astype(np.float32)
    return M


def reference(x, p, Ry, RxT):
    h = front_end(x, p)
    z = jnp.einsum("bk,kyx->byx", h, p["W2r"]) + p["b2r"]
    img = jax.nn.sigmoid(z)
    out = jnp.einsum("hy,byx->bhx", Ry, img)
    return jnp.einsum("bhx,xw->bhw", out, RxT)


if __name__ == "__main__":
    B = 4
    H_OUT, W_OUT = 16, 16          # module constructor args (h, w)
    nh = 3

    key = jax.random.PRNGKey(0)
    keys = jax.random.split(key, 8)

    # Deterministic parameter init (PyTorch-default-style scales).
    lim1 = 1.0 / np.sqrt(3.0)
    lim2 = 1.0 / np.sqrt(nh)
    params = {
        "bn1_gamma": jnp.ones((3,), jnp.float32),
        "bn1_beta": jnp.zeros((3,), jnp.float32),
        "bn1_mean": jnp.zeros((3,), jnp.float32),
        "bn1_var": jnp.ones((3,), jnp.float32),
        "W1": jax.random.uniform(keys[0], (nh, 3), jnp.float32, -lim1, lim1),
        "b1": jax.random.uniform(keys[1], (nh,), jnp.float32, -lim1, lim1),
        "bn2_gamma": jnp.ones((nh,), jnp.float32),
        "bn2_beta": jnp.zeros((nh,), jnp.float32),
        "bn2_mean": jnp.zeros((nh,), jnp.float32),
        "bn2_var": jnp.ones((nh,), jnp.float32),
        # Linear(nh, 64*128): weight stored already transposed+reshaped to (3,64,128)
        "W2r": jax.random.uniform(keys[2], (nh, SIZE_Y, SIZE_X), jnp.float32, -lim2, lim2),
        "b2r": jax.random.uniform(keys[3], (SIZE_Y, SIZE_X), jnp.float32, -lim2, lim2),
    }

    Ry = jnp.asarray(bilinear_matrix(H_OUT, SIZE_Y))          # (h, 64)
    RxT = jnp.asarray(bilinear_matrix(W_OUT, SIZE_X).T)       # (128, w)

    x = jax.random.normal(keys[4], (B, 3), jnp.float32)

    h_feat = front_end(x, params)
    out = fill_in_to_image(h_feat, params["W2r"], params["b2r"], Ry, RxT)
    out = jax.block_until_ready(out)

    ref = jax.block_until_ready(reference(x, params, Ry, RxT))
    assert out.shape == (B, H_OUT, W_OUT)
    np.testing.assert_allclose(np.asarray(out), np.asarray(ref), rtol=1e-5, atol=1e-5)

    print("KERNEL_OK")
</pallas_src>

<mosaic_0001>
module attributes {stable_mosaic.version = 11 : i64} {
  func.func @fill_in_kernel(%arg0: i32, %arg1: memref<4x3xf32, #tpu.memory_space<smem>>, %arg2: memref<3x64x128xf32, #tpu.memory_space<vmem>>, %arg3: memref<64x128xf32, #tpu.memory_space<vmem>>, %arg4: memref<16x64xf32, #tpu.memory_space<vmem>>, %arg5: memref<128x16xf32, #tpu.memory_space<vmem>>, %arg6: memref<64x16xf32, #tpu.memory_space<vmem>>) attributes {dimension_semantics = [#tpu.dimension_semantics<parallel>], iteration_bounds = array<i64: 1>, scalar_prefetch = 0 : i64, scratch_operands = 0 : i64, tpu.core_type = #tpu.core_type<tc>, window_params = [{transform_indices = @transform_0, window_bounds = array<i64: 4, 3>}, {pipeline_mode = #tpu.pipeline_mode<synchronous>, transform_indices = @transform_1, window_bounds = array<i64: 3, 64, 128>}, {pipeline_mode = #tpu.pipeline_mode<synchronous>, transform_indices = @transform_2, window_bounds = array<i64: 64, 128>}, {pipeline_mode = #tpu.pipeline_mode<synchronous>, transform_indices = @transform_3, window_bounds = array<i64: 16, 64>}, {pipeline_mode = #tpu.pipeline_mode<synchronous>, transform_indices = @transform_4, window_bounds = array<i64: 128, 16>}, {transform_indices = @transform_5, window_bounds = array<i64: 64, 16>}]} {
    %c4_i32 = arith.constant 4 : i32
    %0 = arith.muli %arg0, %c4_i32 : i32
    %c0_i32 = arith.constant 0 : i32
    %1 = arith.addi %0, %c0_i32 : i32
    %2 = arith.index_cast %1 : i32 to index
    %c0 = arith.constant 0 : index
    %3 = memref.load %arg1[%2, %c0] : memref<4x3xf32, #tpu.memory_space<smem>>
    %c0_i32_0 = arith.constant 0 : i32
    %4 = arith.addi %0, %c0_i32_0 : i32
    %5 = arith.index_cast %4 : i32 to index
    %c1 = arith.constant 1 : index
    %6 = memref.load %arg1[%5, %c1] : memref<4x3xf32, #tpu.memory_space<smem>>
    %c0_i32_1 = arith.constant 0 : i32
    %7 = arith.addi %0, %c0_i32_1 : i32
    %8 = arith.index_cast %7 : i32 to index
    %c2 = arith.constant 2 : index
    %9 = memref.load %arg1[%8, %c2] : memref<4x3xf32, #tpu.memory_space<smem>>
    %c1_i32 = arith.constant 1 : i32
    %10 = arith.addi %0, %c1_i32 : i32
    %11 = arith.index_cast %10 : i32 to index
    %c0_2 = arith.constant 0 : index
    %12 = memref.load %arg1[%11, %c0_2] : memref<4x3xf32, #tpu.memory_space<smem>>
    %c1_i32_3 = arith.constant 1 : i32
    %13 = arith.addi %0, %c1_i32_3 : i32
    %14 = arith.index_cast %13 : i32 to index
    %c1_4 = arith.constant 1 : index
    %15 = memref.load %arg1[%14, %c1_4] : memref<4x3xf32, #tpu.memory_space<smem>>
    %c1_i32_5 = arith.constant 1 : i32
    %16 = arith.addi %0, %c1_i32_5 : i32
    %17 = arith.index_cast %16 : i32 to index
    %c2_6 = arith.constant 2 : index
    %18 = memref.load %arg1[%17, %c2_6] : memref<4x3xf32, #tpu.memory_space<smem>>
    %c2_i32 = arith.constant 2 : i32
    %19 = arith.addi %0, %c2_i32 : i32
    %20 = arith.index_cast %19 : i32 to index
    %c0_7 = arith.constant 0 : index
    %21 = memref.load %arg1[%20, %c0_7] : memref<4x3xf32, #tpu.memory_space<smem>>
    %c2_i32_8 = arith.constant 2 : i32
    %22 = arith.addi %0, %c2_i32_8 : i32
    %23 = arith.index_cast %22 : i32 to index
    %c1_9 = arith.constant 1 : index
    %24 = memref.load %arg1[%23, %c1_9] : memref<4x3xf32, #tpu.memory_space<smem>>
    %c2_i32_10 = arith.constant 2 : i32
    %25 = arith.addi %0, %c2_i32_10 : i32
    %26 = arith.index_cast %25 : i32 to index
    %c2_11 = arith.constant 2 : index
    %27 = memref.load %arg1[%26, %c2_11] : memref<4x3xf32, #tpu.memory_space<smem>>
    %c3_i32 = arith.constant 3 : i32
    %28 = arith.addi %0, %c3_i32 : i32
    %29 = arith.index_cast %28 : i32 to index
    %c0_12 = arith.constant 0 : index
    %30 = memref.load %arg1[%29, %c0_12] : memref<4x3xf32, #tpu.memory_space<smem>>
    %c3_i32_13 = arith.constant 3 : i32
    %31 = arith.addi %0, %c3_i32_13 : i32
    %32 = arith.index_cast %31 : i32 to index
    %c1_14 = arith.constant 1 : index
    %33 = memref.load %arg1[%32, %c1_14] : memref<4x3xf32, #tpu.memory_space<smem>>
    %c3_i32_15 = arith.constant 3 : i32
    %34 = arith.addi %0, %c3_i32_15 : i32
    %35 = arith.index_cast %34 : i32 to index
    %c2_16 = arith.constant 2 : index
    %36 = memref.load %arg1[%35, %c2_16] : memref<4x3xf32, #tpu.memory_space<smem>>
    %c0_17 = arith.constant 0 : index
    %c0_18 = arith.constant 0 : index
    %c0_19 = arith.constant 0 : index
    %37 = vector.load %arg2[%c0_17, %c0_18, %c0_19] : memref<3x64x128xf32, #tpu.memory_space<vmem>>, vector<1x64x128xf32>
    %38 = vector.shape_cast %37 : vector<1x64x128xf32> to vector<64x128xf32>
    %c1_20 = arith.constant 1 : index
    %c0_21 = arith.constant 0 : index
    %c0_22 = arith.constant 0 : index
    %39 = vector.load %arg2[%c1_20, %c0_21, %c0_22] : memref<3x64x128xf32, #tpu.memory_space<vmem>>, vector<1x64x128xf32>
    %40 = vector.shape_cast %39 : vector<1x64x128xf32> to vector<64x128xf32>
    %c2_23 = arith.constant 2 : index
    %c0_24 = arith.constant 0 : index
    %c0_25 = arith.constant 0 : index
    %41 = vector.load %arg2[%c2_23, %c0_24, %c0_25] : memref<3x64x128xf32, #tpu.memory_space<vmem>>, vector<1x64x128xf32>
    %42 = vector.shape_cast %41 : vector<1x64x128xf32> to vector<64x128xf32>
    %c0_26 = arith.constant 0 : index
    %c0_27 = arith.constant 0 : index
    %43 = vector.load %arg3[%c0_26, %c0_27] : memref<64x128xf32, #tpu.memory_space<vmem>>, vector<64x128xf32>
    %c0_28 = arith.constant 0 : index
    %c0_29 = arith.constant 0 : index
    %44 = vector.load %arg4[%c0_28, %c0_29] : memref<16x64xf32, #tpu.memory_space<vmem>>, vector<16x64xf32>
    %45 = vector.broadcast %3 : f32 to vector<64x128xf32>
    %46 = arith.mulf %45, %38 : vector<64x128xf32>
    %47 = vector.broadcast %6 : f32 to vector<64x128xf32>
    %48 = arith.mulf %47, %40 : vector<64x128xf32>
    %49 = arith.addf %46, %48 : vector<64x128xf32>
    %50 = vector.broadcast %9 : f32 to vector<64x128xf32>
    %51 = arith.mulf %50, %42 : vector<64x128xf32>
    %52 = arith.addf %49, %51 : vector<64x128xf32>
    %53 = arith.addf %52, %43 : vector<64x128xf32>
    %54 = arith.negf %53 : vector<64x128xf32>
    %55 = math.exp %54 : vector<64x128xf32>
    %cst = arith.constant 1.000000e+00 : f32
    %56 = vector.broadcast %cst : f32 to vector<64x128xf32>
    %57 = arith.addf %56, %55 : vector<64x128xf32>
    %58 = arith.divf %56, %57 : vector<64x128xf32>
    %cst_30 = arith.constant dense<0.000000e+00> : vector<16x128xf32>
    %59 = tpu.matmul %44, %58, %cst_30 {dimension_numbers = #tpu.dot_dimension_numbers<[1], [0], [0], [1], [0, 0, 1, 1], [], []>} : vector<16x64xf32>, vector<64x128xf32>, vector<16x128xf32> -> vector<16x128xf32>
    %60 = vector.broadcast %12 : f32 to vector<64x128xf32>
    %61 = arith.mulf %60, %38 : vector<64x128xf32>
    %62 = vector.broadcast %15 : f32 to vector<64x128xf32>
    %63 = arith.mulf %62, %40 : vector<64x128xf32>
    %64 = arith.addf %61, %63 : vector<64x128xf32>
    %65 = vector.broadcast %18 : f32 to vector<64x128xf32>
    %66 = arith.mulf %65, %42 : vector<64x128xf32>
    %67 = arith.addf %64, %66 : vector<64x128xf32>
    %68 = arith.addf %67, %43 : vector<64x128xf32>
    %69 = arith.negf %68 : vector<64x128xf32>
    %70 = math.exp %69 : vector<64x128xf32>
    %cst_31 = arith.constant 1.000000e+00 : f32
    %71 = vector.broadcast %cst_31 : f32 to vector<64x128xf32>
    %72 = arith.addf %71, %70 : vector<64x128xf32>
    %73 = arith.divf %71, %72 : vector<64x128xf32>
    %cst_32 = arith.constant dense<0.000000e+00> : vector<16x128xf32>
    %74 = tpu.matmul %44, %73, %cst_32 {dimension_numbers = #tpu.dot_dimension_numbers<[1], [0], [0], [1], [0, 0, 1, 1], [], []>} : vector<16x64xf32>, vector<64x128xf32>, vector<16x128xf32> -> vector<16x128xf32>
    %75 = vector.broadcast %21 : f32 to vector<64x128xf32>
    %76 = arith.mulf %75, %38 : vector<64x128xf32>
    %77 = vector.broadcast %24 : f32 to vector<64x128xf32>
    %78 = arith.mulf %77, %40 : vector<64x128xf32>
    %79 = arith.addf %76, %78 : vector<64x128xf32>
    %80 = vector.broadcast %27 : f32 to vector<64x128xf32>
    %81 = arith.mulf %80, %42 : vector<64x128xf32>
    %82 = arith.addf %79, %81 : vector<64x128xf32>
    %83 = arith.addf %82, %43 : vector<64x128xf32>
    %84 = arith.negf %83 : vector<64x128xf32>
    %85 = math.exp %84 : vector<64x128xf32>
    %cst_33 = arith.constant 1.000000e+00 : f32
    %86 = vector.broadcast %cst_33 : f32 to vector<64x128xf32>
    %87 = arith.addf %86, %85 : vector<64x128xf32>
    %88 = arith.divf %86, %87 : vector<64x128xf32>
    %cst_34 = arith.constant dense<0.000000e+00> : vector<16x128xf32>
    %89 = tpu.matmul %44, %88, %cst_34 {dimension_numbers = #tpu.dot_dimension_numbers<[1], [0], [0], [1], [0, 0, 1, 1], [], []>} : vector<16x64xf32>, vector<64x128xf32>, vector<16x128xf32> -> vector<16x128xf32>
    %90 = vector.broadcast %30 : f32 to vector<64x128xf32>
    %91 = arith.mulf %90, %38 : vector<64x128xf32>
    %92 = vector.broadcast %33 : f32 to vector<64x128xf32>
    %93 = arith.mulf %92, %40 : vector<64x128xf32>
    %94 = arith.addf %91, %93 : vector<64x128xf32>
    %95 = vector.broadcast %36 : f32 to vector<64x128xf32>
    %96 = arith.mulf %95, %42 : vector<64x128xf32>
    %97 = arith.addf %94, %96 : vector<64x128xf32>
    %98 = arith.addf %97, %43 : vector<64x128xf32>
    %99 = arith.negf %98 : vector<64x128xf32>
    %100 = math.exp %99 : vector<64x128xf32>
    %cst_35 = arith.constant 1.000000e+00 : f32
    %101 = vector.broadcast %cst_35 : f32 to vector<64x128xf32>
    %102 = arith.addf %101, %100 : vector<64x128xf32>
    %103 = arith.divf %101, %102 : vector<64x128xf32>
    %cst_36 = arith.constant dense<0.000000e+00> : vector<16x128xf32>
    %104 = tpu.matmul %44, %103, %cst_36 {dimension_numbers = #tpu.dot_dimension_numbers<[1], [0], [0], [1], [0, 0, 1, 1], [], []>} : vector<16x64xf32>, vector<64x128xf32>, vector<16x128xf32> -> vector<16x128xf32>
    %105 = tpu.concatenate %59, %74, %89, %104 in 0 : vector<16x128xf32>, vector<16x128xf32>, vector<16x128xf32>, vector<16x128xf32> -> vector<64x128xf32>
    %c0_37 = arith.constant 0 : index
    %c0_38 = arith.constant 0 : index
    %106 = vector.load %arg5[%c0_37, %c0_38] : memref<128x16xf32, #tpu.memory_space<vmem>>, vector<128x16xf32>
    %cst_39 = arith.constant dense<0.000000e+00> : vector<64x16xf32>
    %107 = tpu.matmul %105, %106, %cst_39 {dimension_numbers = #tpu.dot_dimension_numbers<[1], [0], [0], [1], [0, 0, 1, 1], [], []>} : vector<64x128xf32>, vector<128x16xf32>, vector<64x16xf32> -> vector<64x16xf32>
    %c0_40 = arith.constant 0 : index
    %c0_41 = arith.constant 0 : index
    %108 = vector.load %arg6[%c0_40, %c0_41] : memref<64x16xf32, #tpu.memory_space<vmem>>, vector<64x16xf32>
    tpu.vector_store %arg6[%c0_40, %c0_41], %107 {strides = array<i32>} : memref<64x16xf32, #tpu.memory_space<vmem>>, vector<64x16xf32>,
    return
  }
  func.func @transform_0(%arg0: i32) -> (i32, i32) {
    %c0_i32 = arith.constant 0 : i32
    %c0_i32_0 = arith.constant 0 : i32
    %c0_i32_1 = arith.constant 0 : i32
    return %c0_i32, %c0_i32_0 : i32, i32
  }
  func.func @transform_1(%arg0: i32) -> (i32, i32, i32) {
    %c0_i32 = arith.constant 0 : i32
    %c0_i32_0 = arith.constant 0 : i32
    %c0_i32_1 = arith.constant 0 : i32
    %c0_i32_2 = arith.constant 0 : i32
    return %c0_i32, %c0_i32_0, %c0_i32_1 : i32, i32, i32
  }
  func.func @transform_2(%arg0: i32) -> (i32, i32) {
    %c0_i32 = arith.constant 0 : i32
    %c0_i32_0 = arith.constant 0 : i32
    %c0_i32_1 = arith.constant 0 : i32
    return %c0_i32, %c0_i32_0 : i32, i32
  }
  func.func @transform_3(%arg0: i32) -> (i32, i32) {
    %c0_i32 = arith.constant 0 : i32
    %c0_i32_0 = arith.constant 0 : i32
    %c0_i32_1 = arith.constant 0 : i32
    return %c0_i32, %c0_i32_0 : i32, i32
  }
  func.func @transform_4(%arg0: i32) -> (i32, i32) {
    %c0_i32 = arith.constant 0 : i32
    %c0_i32_0 = arith.constant 0 : i32
    %c0_i32_1 = arith.constant 0 : i32
    return %c0_i32, %c0_i32_0 : i32, i32
  }
  func.func @transform_5(%arg0: i32) -> (i32, i32) {
    %c0_i32 = arith.constant 0 : i32
    %c0_i32_0 = arith.constant 0 : i32
    return %arg0, %c0_i32 : i32, i32
  }
}

</mosaic_0001>

<bundles_post_ra>
// kernel: tpu_custom_call.1
= control target key start
LH: loop header
LB: loop body
LE: loop exit
PB: predicated region body
PF: predicated region fallthrough
CT: control target
= control target key end

     0   :  { %10 = vsyncpa [#allocation4], 0  ;;  %s1870_s0 = inlined_call_operand.vmem [shape: f32[4,3], index: 0, kind: input, shape index: {}]   ;;  %s1871_s1 = inlined_call_operand.hbm [shape: f32[3,64,128], index: 1, kind: input, shape index: {}]   ;;  %s1872_s2 = inlined_call_operand.vmem [shape: f32[64,128], index: 2, kind: input, shape index: {}]   ;;  %s1873_s3 = inlined_call_operand.vmem [shape: f32[16,64], index: 3, kind: input, shape index: {}]   ;;  %s1874_s4 = inlined_call_operand.vmem [shape: f32[128,16], index: 4, kind: input, shape index: {}]   ;;  %s1875_s5 = inlined_call_operand.vmem [shape: f32[64,16], index: 5, kind: output, shape index: {}]  }
   0x1   :  { %s18_s20 = sshll.u32 %s1870_s0, 4  ;;  %s19_s20 = int_to_ptr.vmem [resolvable:$true] %s18_s20 }
   0x2   :  { %11 = vsyncpa [#allocation3], 0  ;;  %s1317_s21 = scalar_lea.vmem %s19_s20, 64  ;;  %p1322_p1 = scmp.lt.s32.totalorder %s19_s20, %s19_s20 }
   0x3   :  { %p1318_p0 = scmp.ne.s32.totalorder %s19_s20, %s1317_s21  ;;  %p1323_p2 = scmp.lt.s32.totalorder %s1317_s21, %s1317_s21 }
   0x5   :  { %p1324_p3 = por %p1323_p2, %p1322_p1 }
   0x7   :  { %p1325_p4 = pnand %p1324_p3, %p1318_p0 }
   0x9   :  { %1328 = shalt.err (!%p1325_p4)
}
   0xa   :  { %s1353_s22 = smov [#allocation2]   ;;  %s1354_s23 = smov [#allocation5]  }
   0xb   :  { %21 = dma.vmem_to_smem %s19_s20, 64, %s1353_s22, [#allocation4]  }
   0xc   :  { %s27_s24 = sshll.u32 %s1354_s23, 4  ;;  %s28_s24 = int_to_ptr.vmem [resolvable:$true] %s27_s24 }
   0xd   :  { %s1337_s25 = scalar_lea.vmem %s28_s24, 3072  ;;  %p1342_p6 = scmp.lt.s32.totalorder %s28_s24, %s28_s24 }
   0xe   :  { %p1338_p5 = scmp.ne.s32.totalorder %s28_s24, %s1337_s25  ;;  %p1343_p7 = scmp.lt.s32.totalorder %s1337_s25, %s1337_s25 }
  0x10   :  { %p1344_p8 = por %p1343_p7, %p1342_p6 }
  0x12   :  { %p1345_p9 = pnand %p1344_p8, %p1338_p5 }
  0x14   :  { %1348 = shalt.err (!%p1345_p9)
}
  0x15   :  { %s1355_s0 = smov 128   ;;  %s1356_s26 = smov 8  }
  0x16   :  { %33 = dma.hbm_to_vmem [thread:$0]  %s1871_s1, 3072, %s28_s24, [#allocation3], %s1355_s0, %s1355_s0, %s1356_s26  }
  0x17   :  { %1349 = dma.done.wait [#allocation4], 64  }
  0x18   :  { %1350 = vsyncadd [#allocation4], 4294967232 }
  0x19   :  { %1351 = dma.done.wait [#allocation3], 3072  }
  0x1a   :  { %1352 = vsyncadd [#allocation3], 4294964224 }
  0x1b   :  { %46 = sfence }
  0x1c   :  { %s49_s29 = sld [smem:[#allocation2]]  ;;  %v1395_v0 = vld [vmem:[#allocation5 + $0x38] sm:$0xff]  ;;  %v1397_v1 = vld [vmem:[#allocation5 + $0x30] sm:$0xff]  ;;  %v1399_v2 = vld [vmem:[#allocation5 + $0x28] sm:$0xff]  ;;  %vm210_vm0 = vcmask 523264   ;;  %vm935_vm1 = vcmask 130048  }
  0x1d   :  { %s950_s30 = sld [smem:[#allocation2 + $0x1]]  ;;  %v1403_v3 = vld [vmem:[#allocation5 + $0x78] sm:$0xff]  ;;  %v1405_v4 = vld [vmem:[#allocation5 + $0x70] sm:$0xff]  ;;  %v1407_v5 = vld [vmem:[#allocation5 + $0x68] sm:$0xff] }
  0x1e   :  { %s951_s6 = sld [smem:[#allocation2 + $0x2]]  ;;  %v1411_v6 = vld [vmem:[#allocation5 + $0xb8] sm:$0xff]  ;;  %v1415_v8 = vld [vmem:[#allocation5 + $0xb0] sm:$0xff]  ;;  %v1417_v9 = vld [vmem:[#allocation5 + $0xa8] sm:$0xff] }
  0x1f   :  { %s952_s7 = sld [smem:[#allocation2 + $0x80]]  ;;  %v1439_v18 = vld [vmem:[#allocation5 + $0x20] sm:$0xff]  ;;  %v1462_v28 = vld [vmem:[%s1872_s2 + $0x38] sm:$0xff]  ;;  %v1472_v31 = vld [vmem:[%s1872_s2 + $0x30] sm:$0xff] }
  0x20   :  { %s1393_s8 = sld [smem:[#allocation2 + $0x81]]  ;;  %v1457_v27 = vld [vmem:[%s1873_s3] sm:$0xff]  ;;  %v1488_v38 = vld [vmem:[%s1872_s2 + $0x28] sm:$0xff]  ;;  %v1506_v49 = vld [vmem:[#allocation5 + $0x18] sm:$0xff] }
  0x21   :  { %s1401_s9 = sld [smem:[#allocation2 + $0x82]]  ;;  %1081 = vmatprep.mubr.msk.f32.mxu1 %vm210_vm0, %v1457_v27  ;;  %1119 = vmatprep.mubr.msk.f32.mxu0 %vm210_vm0, %v1457_v27  ;;  %v1490_v39 = vld [vmem:[#allocation5 + $0x60] sm:$0xff]  ;;  %v1513_v54 = vld [vmem:[#allocation5 + $0x58] sm:$0xff]  ;;  %v1519_v60 = vld [vmem:[#allocation5 + $0x10] sm:$0xff] }
  0x22   :  { %s1409_s1 = sld [smem:[#allocation2 + $0x180]]  ;;  %v1413_v7 = vstv %s49_s29  ;;  %v1497_v44 = vld [vmem:[#allocation5 + $0xa0] sm:$0xff]  ;;  %v1515_v55 = vld [vmem:[#allocation5 + $0x98] sm:$0xff] }
  0x23   :  { %s1419_s10 = sld [smem:[#allocation2 + $0x181]]  ;;  %v119_v10 = vmul.f32 %v1413_v7, %v1395_v0  ;;  %v1423_v11 = vstv %s950_s30  ;;  %v118_v12 = vmul.f32 %v1413_v7, %v1397_v1  ;;  %v117_v13 = vmul.f32 %v1413_v7, %v1399_v2 }
  0x24   :  { %s1429_s11 = sld [smem:[#allocation2 + $0x182]]  ;;  %v128_v14 = vmul.f32 %v1423_v11, %v1403_v3  ;;  %v1433_v15 = vstv %s951_s6  ;;  %v127_v16 = vmul.f32 %v1423_v11, %v1405_v4  ;;  %v126_v17 = vmul.f32 %v1423_v11, %v1407_v5 }
  0x25   :  { %v145_v19 = vmul.f32 %v1433_v15, %v1411_v6  ;;  %v1443_v20 = vstv %s952_s7  ;;  %v144_v21 = vmul.f32 %v1433_v15, %v1415_v8  ;;  %v143_v22 = vmul.f32 %v1433_v15, %v1417_v9  ;;  %s1577_s0 = sld [smem:[#allocation2 + $0x100]] }
  0x26   :  { %v136_v23 = vadd.f32 %v128_v14, %v119_v10  ;;  %v300_v24 = vmul.f32 %v1443_v20, %v1395_v0  ;;  %v1452_v25 = vstv %s1393_s8  ;;  %v135_v26 = vadd.f32 %v127_v16, %v118_v12  ;;  %v1524_v12 = vld [vmem:[#allocation5 + $0x50] sm:$0xff]  ;;  %v1529_v14 = vld [vmem:[%s1872_s2 + $0x20] sm:$0xff]  ;;  %s1603_s30 = sld [smem:[#allocation2 + $0x101]] }
  0x27   :  { %v309_v29 = vmul.f32 %v1452_v25, %v1403_v3  ;;  %v1467_v30 = vstv %s1401_s9  ;;  %v134_v32 = vadd.f32 %v126_v17, %v117_v13  ;;  %v116_v33 = vmul.f32 %v1413_v7, %v1439_v18 }
  0x28   :  { %v153_v34 = vadd.f32 %v145_v19, %v136_v23  ;;  %v326_v35 = vmul.f32 %v1467_v30, %v1411_v6  ;;  %v1483_v36 = vstv %s1409_s1  ;;  %v152_v37 = vadd.f32 %v144_v21, %v135_v26  ;;  %v1535_v19 = vld [vmem:[#allocation5 + $0x90] sm:$0xff]  ;;  %v1537_v21 = vld [vmem:[#allocation5 + $0x8] sm:$0xff] }
  0x29   :  { %v317_v40 = vadd.f32 %v309_v29, %v300_v24  ;;  %v648_v41 = vmul.f32 %v1483_v36, %v1395_v0  ;;  %v1495_v42 = vstv %s1419_s10  ;;  %v151_v43 = vadd.f32 %v143_v22, %v134_v32  ;;  %v1541_v26 = vld [vmem:[#allocation5 + $0x48] sm:$0xff] }
  0x2a   :  { %v161_v45 = vadd.f32 %v153_v34, %v1462_v28  ;;  %v657_v46 = vmul.f32 %v1495_v42, %v1403_v3  ;;  %v1503_v47 = vstv %s1429_s11  ;;  %v160_v48 = vadd.f32 %v152_v37, %v1472_v31  ;;  %v1546_v34 = vld [vmem:[#allocation5 + $0x88] sm:$0xff]  ;;  %v1550_v37 = vld [vmem:[#allocation5 + $0x40] sm:$0xff] }
  0x2b   :  { %v334_v50 = vadd.f32 %v326_v35, %v317_v40  ;;  %v674_v51 = vmul.f32 %v1503_v47, %v1411_v6  ;;  %v159_v52 = vadd.f32 %v151_v43, %v1488_v38  ;;  %v125_v53 = vmul.f32 %v1423_v11, %v1490_v39  ;;  %v1548_v35 = vld [vmem:[#allocation5] sm:$0xff] }
  0x2c   :  { %v968_v56 = vmul.f32 -1.442695, %v161_v45  ;;  %v665_v57 = vadd.f32 %v657_v46, %v648_v41  ;;  %v967_v58 = vmul.f32 -1.442695, %v160_v48  ;;  %v142_v59 = vmul.f32 %v1433_v15, %v1497_v44  ;;  %v1556_v41 = vld [vmem:[%s1872_s2 + $0x18] sm:$0xff] }
  0x2d   :  { %v342_v61 = vadd.f32 %v334_v50, %v1462_v28  ;;  %v966_v62 = vmul.f32 -1.442695, %v159_v52  ;;  %v133_v63 = vadd.f32 %v125_v53, %v116_v33  ;;  %v115_v10 = vmul.f32 %v1413_v7, %v1506_v49  ;;  %v1564_v52 = vld [vmem:[#allocation5 + $0x80] sm:$0xff] }
  0x2e   :  { %1189 = vpow2.f32 %v968_v56  ;;  %v682_v13 = vadd.f32 %v674_v51, %v665_v57  ;;  %v124_v16 = vmul.f32 %v1423_v11, %v1513_v54  ;;  %v141_v17 = vmul.f32 %v1433_v15, %v1515_v55  ;;  %v1569_v56 = vld [vmem:[%s1872_s2 + $0x10] sm:$0xff] }
  0x2f   :  { %v978_v22 = vmul.f32 -1.442695, %v342_v61  ;;  %1191 = vpow2.f32 %v967_v58  ;;  %v150_v23 = vadd.f32 %v142_v59, %v133_v63  ;;  %v114_v24 = vmul.f32 %v1413_v7, %v1519_v60 }
  0x30   :  { %v690_v29 = vadd.f32 %v682_v13, %v1462_v28  ;;  %1193 = vpow2.f32 %v966_v62  ;;  %v132_v32 = vadd.f32 %v124_v16, %v115_v10  ;;  %v123_v33 = vmul.f32 %v1423_v11, %v1524_v12  ;;  %v1583_v10 = vld [vmem:[%s1872_s2 + $0x8] sm:$0xff] }
  0x31   :  { %1195 = vpow2.f32 %v978_v22  ;;  %v158_v40 = vadd.f32 %v150_v23, %v1529_v14  ;;  %v140_v43 = vmul.f32 %v1433_v15, %v1535_v19  ;;  %v113_v45 = vmul.f32 %v1413_v7, %v1537_v21  ;;  %v1593_v23 = vld [vmem:[%s1872_s2] sm:$0xff]  ;;  %s1606_s2 = sld [smem:[#allocation2 + $0x102]] }
  0x32   :  { %v998_v46 = vmul.f32 -1.442695, %v690_v29  ;;  %v149_v48 = vadd.f32 %v141_v17, %v132_v32  ;;  %v131_v50 = vadd.f32 %v123_v33, %v114_v24  ;;  %v122_v51 = vmul.f32 %v1423_v11, %v1541_v26 }
  0x33   :  { %v965_v53 = vmul.f32 -1.442695, %v158_v40  ;;  %v139_v57 = vmul.f32 %v1433_v15, %v1546_v34  ;;  %v112_v58 = vmul.f32 %v1413_v7, %v1548_v35  ;;  %v121_v59 = vmul.f32 %v1423_v11, %v1550_v37 }
  0x34   :  { %1197 = vpow2.f32 %v998_v46  ;;  %v157_v61 = vadd.f32 %v149_v48, %v1556_v41  ;;  %v148_v62 = vadd.f32 %v140_v43, %v131_v50  ;;  %v130_v63 = vadd.f32 %v122_v51, %v113_v45 }
  0x35   :  { %1199 = vpow2.f32 %v965_v53  ;;  %v129_v13 = vadd.f32 %v121_v59, %v112_v58  ;;  %v138_v7 = vmul.f32 %v1433_v15, %v1564_v52  ;;  %v299_v11 = vmul.f32 %v1443_v20, %v1397_v1 }
  0x36   :  { %v964_v16 = vmul.f32 -1.442695, %v157_v61  ;;  %v156_v17 = vadd.f32 %v148_v62, %v1569_v56  ;;  %v147_v22 = vadd.f32 %v139_v57, %v130_v63  ;;  %v308_v24 = vmul.f32 %v1452_v25, %v1405_v4 }
  0x37   :  { %v146_v29 = vadd.f32 %v138_v7, %v129_v13  ;;  %v325_v32 = vmul.f32 %v1467_v30, %v1415_v8  ;;  %v298_v15 = vmul.f32 %v1443_v20, %v1399_v2  ;;  %v307_v33 = vmul.f32 %v1452_v25, %v1407_v5 }
  0x38   :  { %1201 = vpow2.f32 %v964_v16  ;;  %v963_v40 = vmul.f32 -1.442695, %v156_v17  ;;  %v155_v43 = vadd.f32 %v147_v22, %v1583_v10  ;;  %v316_v45 = vadd.f32 %v308_v24, %v299_v11 }
  0x39   :  { %v154_v46 = vadd.f32 %v146_v29, %v1593_v23  ;;  %v315_v48 = vadd.f32 %v307_v33, %v298_v15  ;;  %v324_v50 = vmul.f32 %v1467_v30, %v1417_v9  ;;  %v297_v51 = vmul.f32 %v1443_v20, %v1439_v18 }
  0x3a   :  { %1203 = vpow2.f32 %v963_v40  ;;  %v962_v53 = vmul.f32 -1.442695, %v155_v43  ;;  %v333_v57 = vadd.f32 %v325_v32, %v316_v45  ;;  %v306_v58 = vmul.f32 %v1452_v25, %v1490_v39 }
  0x3b   :  { %v1190_v59 = vpop.eup %1189  ;;  %v961_v61 = vmul.f32 -1.442695, %v154_v46  ;;  %v332_v62 = vadd.f32 %v324_v50, %v315_v48  ;;  %v323_v63 = vmul.f32 %v1467_v30, %v1497_v44  ;;  %v1618_v13 = vstv %s1577_s0 }
  0x3c   :  { %v1192_v7 = vpop.eup %1191  ;;  %v193_v11 = vadd.f32 1.0, %v1190_v59  ;;  %1205 = vpow2.f32 %v962_v53  ;;  %v341_v16 = vadd.f32 %v333_v57, %v1472_v31  ;;  %v314_v17 = vadd.f32 %v306_v58, %v297_v51 }
  0x3d   :  { %v1194_v22 = vpop.eup %1193  ;;  %v192_v24 = vadd.f32 1.0, %v1192_v7  ;;  %1207 = vpow2.f32 %v961_v61  ;;  %v340_v29 = vadd.f32 %v332_v62, %v1488_v38  ;;  %v474_v32 = vmul.f32 %v1618_v13, %v1395_v0 }
  0x3e   :  { %v1196_v15 = vpop.eup %1195  ;;  %1209 = vrcp.f32 %v193_v11  ;;  %v191_v33 = vadd.f32 1.0, %v1194_v22  ;;  %v977_v40 = vmul.f32 -1.442695, %v341_v16  ;;  %v331_v43 = vadd.f32 %v323_v63, %v314_v17 }
  0x3f   :  { %v374_v45 = vadd.f32 1.0, %v1196_v15  ;;  %1211 = vrcp.f32 %v192_v24  ;;  %v976_v46 = vmul.f32 -1.442695, %v340_v29  ;;  %v1625_v48 = vstv %s1603_s30 }
  0x40   :  { %1213 = vrcp.f32 %v191_v33  ;;  %v339_v50 = vadd.f32 %v331_v43, %v1529_v14  ;;  %v483_v51 = vmul.f32 %v1625_v48, %v1403_v3  ;;  %v1631_v53 = vstv %s1606_s2 }
  0x41   :  { %v1198_v57 = vpop.eup %1197  ;;  %1215 = vrcp.f32 %v374_v45  ;;  %v500_v0 = vmul.f32 %v1631_v53, %v1411_v6  ;;  %v296_v58 = vmul.f32 %v1443_v20, %v1506_v49  ;;  %v305_v59 = vmul.f32 %v1452_v25, %v1513_v54 }
  0x42   :  { %v1200_v61 = vpop.eup %1199  ;;  %v1639_v62 = vadd.f32 1.0, %v1198_v57  ;;  %1217 = vpow2.f32 %v977_v40  ;;  %v975_v63 = vmul.f32 -1.442695, %v339_v50  ;;  %v491_v7 = vadd.f32 %v483_v51, %v474_v32 }
  0x43   :  { %v190_v3 = vadd.f32 1.0, %v1200_v61  ;;  %1219 = vpow2.f32 %v976_v46  ;;  %v313_v11 = vadd.f32 %v305_v59, %v296_v58  ;;  %v322_v16 = vmul.f32 %v1467_v30, %v1515_v55 }
  0x44   :  { %1221 = vpow2.f32 %v975_v63  ;;  %v508_v6 = vadd.f32 %v500_v0, %v491_v7  ;;  %v473_v17 = vmul.f32 %v1618_v13, %v1397_v1  ;;  %v482_v22 = vmul.f32 %v1625_v48, %v1405_v4 }
  0x45   :  { %v1202_v24 = vpop.eup %1201  ;;  %1223 = vrcp.f32 %v190_v3  ;;  %v330_v29 = vadd.f32 %v322_v16, %v313_v11  ;;  %v499_v32 = vmul.f32 %v1631_v53, %v1415_v8  ;;  %v295_v15 = vmul.f32 %v1443_v20, %v1519_v60 }
  0x46   :  { %v189_v33 = vadd.f32 1.0, %v1202_v24  ;;  %v516_v40 = vadd.f32 %v508_v6, %v1462_v28  ;;  %v490_v43 = vadd.f32 %v482_v22, %v473_v17  ;;  %v304_v45 = vmul.f32 %v1452_v25, %v1524_v12 }
  0x47   :  { %v1204_v46 = vpop.eup %1203  ;;  %v338_v50 = vadd.f32 %v330_v29, %v1556_v41  ;;  %v321_v51 = vmul.f32 %v1467_v30, %v1535_v19  ;;  %v472_v57 = vmul.f32 %v1618_v13, %v1399_v2  ;;  %v481_v0 = vmul.f32 %v1625_v48, %v1407_v5 }
  0x48   :  { %1225 = vrcp.f32 %v189_v33  ;;  %v188_v58 = vadd.f32 1.0, %v1204_v46  ;;  %v988_v59 = vmul.f32 -1.442695, %v516_v40  ;;  %v507_v28 = vadd.f32 %v499_v32, %v490_v43 }
  0x49   :  { %v1206_v61 = vpop.eup %1205  ;;  %v974_v63 = vmul.f32 -1.442695, %v338_v50  ;;  %v312_v7 = vadd.f32 %v304_v45, %v295_v15  ;;  %v489_v3 = vadd.f32 %v481_v0, %v472_v57  ;;  %v498_v11 = vmul.f32 %v1631_v53, %v1417_v9 }
  0x4a   :  { %v1208_v16 = vpop.eup %1207  ;;  %1227 = vrcp.f32 %v188_v58  ;;  %v187_v6 = vadd.f32 1.0, %v1206_v61  ;;  %v515_v17 = vadd.f32 %v507_v28, %v1472_v31  ;;  %v294_v22 = vmul.f32 %v1443_v20, %v1537_v21 }
  0x4b   :  { %v1210_v24 = vpop.eup %1209  ;;  %v186_v29 = vadd.f32 1.0, %v1208_v16  ;;  %1229 = vpow2.f32 %v988_v59  ;;  %v329_v33 = vadd.f32 %v321_v51, %v312_v7  ;;  %v506_v32 = vadd.f32 %v498_v11, %v489_v3 }
  0x4c   :  { %v1212_v40 = vpop.eup %1211  ;;  %1065 = vmatprep.subr.mxu1 %v1210_v24  ;;  %1231 = vrcp.f32 %v187_v6  ;;  %v987_v15 = vmul.f32 -1.442695, %v515_v17  ;;  %v303_v43 = vmul.f32 %v1452_v25, %v1541_v26  ;;  %v320_v45 = vmul.f32 %v1467_v30, %v1546_v34 }
  0x4d   :  { %v1214_v46 = vpop.eup %1213  ;;  %1066 = vmatpush3.msra.mxu1 %v1210_v24  ;;  %1233 = vrcp.f32 %v186_v29  ;;  %v337_v50 = vadd.f32 %v329_v33, %v1569_v56  ;;  %v514_v57 = vadd.f32 %v506_v32, %v1488_v38  ;;  %v471_v51 = vmul.f32 %v1618_v13, %v1439_v18 }
  0x4e   :  { %v1674_v0 = vpop.eup %1215  ;;  %1067 = vmatprep.subr.mxu1 %v1212_v40  ;;  %1235 = vpow2.f32 %v974_v63  ;;  %v311_v58 = vadd.f32 %v303_v43, %v294_v22  ;;  %v480_v59 = vmul.f32 %v1625_v48, %v1490_v39  ;;  %v497_v28 = vmul.f32 %v1631_v53, %v1497_v44 }
  0x4f   :  { %v1218_v61 = vpop.eup %1217  ;;  %1068 = vmatpush3.msra.mxu1 %v1212_v40  ;;  %1237 = vpow2.f32 %v987_v15  ;;  %v973_v7 = vmul.f32 -1.442695, %v337_v50  ;;  %v986_v3 = vmul.f32 -1.442695, %v514_v57  ;;  %v293_v11 = vmul.f32 %v1443_v20, %v1548_v35 }
  0x50   :  { %v1220_v16 = vpop.eup %1219  ;;  %1069 = vmatprep.subr.mxu1 %v1214_v46  ;;  %v373_v6 = vadd.f32 1.0, %v1218_v61  ;;  %v328_v17 = vadd.f32 %v320_v45, %v311_v58  ;;  %v488_v63 = vadd.f32 %v480_v59, %v471_v51  ;;  %v302_v22 = vmul.f32 %v1452_v25, %v1550_v37 }
  0x51   :  { %v1222_v24 = vpop.eup %1221  ;;  %1070 = vmatpush3.msra.mxu1 %v1214_v46  ;;  %v372_v29 = vadd.f32 1.0, %v1220_v16  ;;  %1239 = vpow2.f32 %v973_v7  ;;  %v319_v33 = vmul.f32 %v1467_v30, %v1564_v52  ;;  %v470_v32 = vmul.f32 %v1618_v13, %v1506_v49 }
  0x52   :  { %v1224_v40 = vpop.eup %1223  ;;  %1241 = vrcp.f32 %v373_v6  ;;  %v371_v20 = vadd.f32 1.0, %v1222_v24  ;;  %v336_v15 = vadd.f32 %v328_v17, %v1583_v10  ;;  %v505_v43 = vadd.f32 %v497_v28, %v488_v63 }
  0x53   :  { %1071 = vmatprep.subr.mxu1 %v1224_v40  ;;  %1243 = vrcp.f32 %v372_v29  ;;  %v310_v45 = vadd.f32 %v302_v22, %v293_v11  ;;  %v479_v25 = vmul.f32 %v1625_v48, %v1513_v54  ;;  %v496_v46 = vmul.f32 %v1631_v53, %v1515_v55 }
  0x54   :  { %1072 = vmatpush3.msra.mxu1 %v1224_v40  ;;  %1245 = vrcp.f32 %v371_v20  ;;  %v972_v30 = vmul.f32 -1.442695, %v336_v15  ;;  %v513_v50 = vadd.f32 %v505_v43, %v1529_v14  ;;  %v469_v57 = vmul.f32 %v1618_v13, %v1519_v60 }
  0x55   :  { %v1226_v51 = vpop.eup %1225  ;;  %1247 = vpow2.f32 %v986_v3  ;;  %v327_v58 = vadd.f32 %v319_v33, %v310_v45  ;;  %v487_v59 = vadd.f32 %v479_v25, %v470_v32  ;;  %v478_v28 = vmul.f32 %v1625_v48, %v1524_v12  ;;  %v1720_v25 = vld [vmem:[%s1873_s3 + $0x8] sm:$0xff] }
  0x56   :  { %1073 = vmatprep.subr.mxu1 %v1226_v51  ;;  %1249 = vpow2.f32 %v972_v30  ;;  %v985_v61 = vmul.f32 -1.442695, %v513_v50  ;;  %v495_v7 = vmul.f32 %v1631_v53, %v1535_v19  ;;  %v647_v11 = vmul.f32 %v1483_v36, %v1397_v1 }
  0x57   :  { %v1228_v16 = vpop.eup %1227  ;;  %1074 = vmatpush3.msra.mxu1 %v1226_v51  ;;  %v335_v6 = vadd.f32 %v327_v58, %v1593_v23  ;;  %v504_v17 = vadd.f32 %v496_v46, %v487_v59  ;;  %1251 = vrcp.f32 %v1639_v62  ;;  %v486_v3 = vadd.f32 %v478_v28, %v469_v57 }
  0x58   :  { %v1230_v63 = vpop.eup %1229  ;;  %1075 = vmatprep.subr.mxu1 %v1228_v16  ;;  %1253 = vpow2.f32 %v985_v61  ;;  %v656_v22 = vmul.f32 %v1495_v42, %v1405_v4  ;;  %v673_v24 = vmul.f32 %v1503_v47, %v1415_v8  ;;  %v468_v1 = vmul.f32 %v1618_v13, %v1537_v21 }
  0x59   :  { %v1232_v29 = vpop.eup %1231  ;;  %1076 = vmatpush3.msra.mxu1 %v1228_v16  ;;  %v548_v33 = vadd.f32 1.0, %v1230_v63  ;;  %v971_v32 = vmul.f32 -1.442695, %v335_v6  ;;  %v512_v40 = vadd.f32 %v504_v17, %v1556_v41  ;;  %v503_v62 = vadd.f32 %v495_v7, %v486_v3 }
  0x5a   :  { %v1234_v20 = vpop.eup %1233  ;;  %1077 = vmatprep.subr.mxu1 %v1232_v29  ;;  %v664_v15 = vadd.f32 %v656_v22, %v647_v11  ;;  %v477_v43 = vmul.f32 %v1625_v48, %v1541_v26  ;;  %v494_v4 = vmul.f32 %v1631_v53, %v1546_v34  ;;  %v646_v8 = vmul.f32 %v1483_v36, %v1399_v2 }
  0x5b   :  { %v1236_v45 = vpop.eup %1235  ;;  %1078 = vmatpush3.msra.mxu1 %v1232_v29  ;;  %1255 = vrcp.f32 %v548_v33  ;;  %v984_v46 = vmul.f32 -1.442695, %v512_v40  ;;  %v511_v30 = vadd.f32 %v503_v62, %v1569_v56  ;;  %v655_v50 = vmul.f32 %v1495_v42, %v1407_v5 }
  0x5c   :  { %v1238_v57 = vpop.eup %1237  ;;  %1079 = vmatprep.subr.mxu1 %v1234_v20  ;;  %v370_v51 = vadd.f32 1.0, %v1236_v45  ;;  %1257 = vpow2.f32 %v971_v32  ;;  %v681_v58 = vadd.f32 %v673_v24, %v664_v15  ;;  %v485_v2 = vadd.f32 %v477_v43, %v468_v1 }
  0x5d   :  { %1080 = vmatpush3.msra.mxu1 %v1234_v20  ;;  %v547_v59 = vadd.f32 1.0, %v1238_v57  ;;  %1259 = vpow2.f32 %v984_v46  ;;  %v983_v28 = vmul.f32 -1.442695, %v511_v30  ;;  %v663_v61 = vadd.f32 %v655_v50, %v646_v8 }
  0x5e   :  { %v1240_v7 = vpop.eup %1239  ;;  %1082 = vmatmul.mubr.msk.f32.vlgmr.msra.gmra.mxu1 %vm210_vm0, %v1720_v25  ;;  %1084 = vmatprep.subr.mxu1 %v1674_v0  ;;  %1261 = vrcp.f32 %v370_v51  ;;  %v689_v5 = vadd.f32 %v681_v58, %v1472_v31  ;;  %v502_v11 = vadd.f32 %v494_v4, %v485_v2  ;;  %v672_v16 = vmul.f32 %v1503_v47, %v1417_v9 }
  0x5f   :  { %v1242_v6 = vpop.eup %1241  ;;  %1085 = vmatpush3.msra.mxu1 %v1674_v0  ;;  %1263 = vrcp.f32 %v547_v59  ;;  %v369_v17 = vadd.f32 1.0, %v1240_v7  ;;  %1100 = vmatprep.mubr.msk.f32.mxu1 %vm210_vm0, %v1457_v27  ;;  %v467_v3 = vmul.f32 %v1618_v13, %v1548_v35  ;;  %v476_v63 = vmul.f32 %v1625_v48, %v1550_v37 }
  0x60   :  { %v1244_v22 = vpop.eup %1243  ;;  %1086 = vmatprep.subr.mxu1 %v1242_v6  ;;  %1265 = vpow2.f32 %v983_v28  ;;  %v997_v31 = vmul.f32 -1.442695, %v689_v5  ;;  %v510_v9 = vadd.f32 %v502_v11, %v1583_v10  ;;  %v680_v24 = vadd.f32 %v672_v16, %v663_v61 }
  0x61   :  { %v1246_v1 = vpop.eup %1245  ;;  %1087 = vmatpush3.msra.mxu1 %v1242_v6  ;;  %1267 = vrcp.f32 %v369_v17  ;;  %v484_v0 = vadd.f32 %v476_v63, %v467_v3  ;;  %v493_v29 = vmul.f32 %v1631_v53, %v1564_v52  ;;  %v645_v13 = vmul.f32 %v1483_v36, %v1439_v18 }
  0x62   :  { %v1248_v33 = vpop.eup %1247  ;;  %1088 = vmatprep.subr.mxu1 %v1244_v22  ;;  %1269 = vpow2.f32 %v997_v31  ;;  %v982_v48 = vmul.f32 -1.442695, %v510_v9  ;;  %v688_v32 = vadd.f32 %v680_v24, %v1488_v38  ;;  %v654_v40 = vmul.f32 %v1495_v42, %v1490_v39 }
  0x63   :  { %v1250_v62 = vpop.eup %1249  ;;  %1089 = vmatpush3.msra.mxu1 %v1244_v22  ;;  %v546_v20 = vadd.f32 1.0, %v1248_v33  ;;  %v501_v15 = vadd.f32 %v493_v29, %v484_v0  ;;  %v671_v43 = vmul.f32 %v1503_v47, %v1497_v44  ;;  %v644_v53 = vmul.f32 %v1483_v36, %v1506_v49 }
  0x64   :  { %v1750_v18 = vpop.eup %1251  ;;  %1090 = vmatprep.subr.mxu1 %v1246_v1  ;;  %v368_v4 = vadd.f32 1.0, %v1250_v62  ;;  %1271 = vpow2.f32 %v982_v48  ;;  %v996_v8 = vmul.f32 -1.442695, %v688_v32  ;;  %v662_v38 = vadd.f32 %v654_v40, %v645_v13 }
  0x65   :  { %v1254_v45 = vpop.eup %1253  ;;  %1091 = vmatpush3.msra.mxu1 %v1246_v1  ;;  %1273 = vrcp.f32 %v546_v20  ;;  %v509_v39 = vadd.f32 %v501_v15, %v1593_v23  ;;  %v653_v46 = vmul.f32 %v1495_v42, %v1513_v54  ;;  %v670_v44 = vmul.f32 %v1503_v47, %v1515_v55 }
  0x66   :  { %1275 = vrcp.f32 %v368_v4  ;;  %v545_v49 = vadd.f32 1.0, %v1254_v45  ;;  %v679_v30 = vadd.f32 %v671_v43, %v662_v38  ;;  %v643_v50 = vmul.f32 %v1483_v36, %v1519_v60 }
  0x67   :  { %1277 = vpow2.f32 %v996_v8  ;;  %v981_v57 = vmul.f32 -1.442695, %v509_v39  ;;  %v661_v51 = vadd.f32 %v653_v46, %v644_v53  ;;  %v652_v58 = vmul.f32 %v1495_v42, %v1524_v12 }
  0x68   :  { %v1256_v2 = vpop.eup %1255  ;;  %1279 = vrcp.f32 %v545_v49  ;;  %v687_v59 = vadd.f32 %v679_v30, %v1529_v14  ;;  %v669_v54 = vmul.f32 %v1503_v47, %v1535_v19  ;;  %v642_v55 = vmul.f32 %v1483_v36, %v1537_v21 }
  0x69   :  { %v1258_v28 = vpop.eup %1257  ;;  %1103 = vmatprep.subr.mxu0 %v1256_v2  ;;  %1281 = vpow2.f32 %v981_v57  ;;  %v678_v60 = vadd.f32 %v670_v44, %v661_v51  ;;  %v660_v61 = vadd.f32 %v652_v58, %v643_v50  ;;  %v651_v7 = vmul.f32 %v1495_v42, %v1541_v26 }
  0x6a   :  { %v1260_v5 = vpop.eup %1259  ;;  %1104 = vmatpush3.msra.mxu0 %v1256_v2  ;;  %v367_v12 = vadd.f32 1.0, %v1258_v28  ;;  %v995_v11 = vmul.f32 -1.442695, %v687_v59  ;;  %v668_v14 = vmul.f32 %v1503_v47, %v1546_v34  ;;  %v641_v19 = vmul.f32 %v1483_v36, %v1548_v35  ;;  %v828_v2 = vld [vmem:[%s1874_s4 + $0x70] sm:$0xff]  ;;  %v827_v59 = vld [vmem:[%s1874_s4 + $0x68] sm:$0xff]  ;;  %v826_v28 = vld [vmem:[%s1874_s4 + $0x60] sm:$0xff] }
  0x6b   :  { %v1262_v16 = vpop.eup %1261  ;;  %v544_v21 = vadd.f32 1.0, %v1260_v5  ;;  %v686_v6 = vadd.f32 %v678_v60, %v1556_v41  ;;  %v677_v17 = vadd.f32 %v669_v54, %v660_v61  ;;  %v659_v3 = vadd.f32 %v651_v7, %v642_v55  ;;  %v825_v61 = vld [vmem:[%s1874_s4 + $0x58] sm:$0xff]  ;;  %v824_v5 = vld [vmem:[%s1874_s4 + $0x50] sm:$0xff] }
  0x6c   :  { %v1264_v63 = vpop.eup %1263  ;;  %1092 = vmatprep.subr.mxu1 %v1262_v16  ;;  %1283 = vrcp.f32 %v367_v12  ;;  %v650_v26 = vmul.f32 %v1495_v42, %v1550_v37  ;;  %v667_v22 = vmul.f32 %v1503_v47, %v1564_v52  ;;  %v823_v12 = vld [vmem:[%s1874_s4 + $0x48] sm:$0xff] }
  0x6d   :  { %v1266_v31 = vpop.eup %1265  ;;  %1093 = vmatpush3.msra.mxu1 %v1262_v16  ;;  %1105 = vmatprep.subr.mxu0 %v1264_v63  ;;  %1285 = vrcp.f32 %v544_v21  ;;  %v994_v36 = vmul.f32 -1.442695, %v686_v6  ;;  %v685_v34 = vadd.f32 %v677_v17, %v1569_v56  ;;  %v676_v35 = vadd.f32 %v668_v14, %v659_v3  ;;  %v822_v14 = vld [vmem:[%s1874_s4 + $0x40] sm:$0xff]  ;;  %v820_v16 = vld [vmem:[%s1874_s4 + $0x30] sm:$0xff]  ;;  %v819_v21 = vld [vmem:[%s1874_s4 + $0x28] sm:$0xff] }
  0x6e   :  { %v1268_v41 = vpop.eup %1267  ;;  %1106 = vmatpush3.msra.mxu0 %v1264_v63  ;;  %v543_v9 = vadd.f32 1.0, %v1266_v31  ;;  %1287 = vpow2.f32 %v995_v11  ;;  %v658_v24 = vadd.f32 %v650_v26, %v641_v19  ;;  %v821_v19 = vld [vmem:[%s1874_s4 + $0x38] sm:$0xff]  ;;  %v816_v17 = vld [vmem:[%s1874_s4 + $0x10] sm:$0xff]  ;;  %v815_v3 = vld [vmem:[%s1874_s4 + $0x8] sm:$0xff] }
  0x6f   :  { %v1270_v1 = vpop.eup %1269  ;;  %1094 = vmatprep.subr.mxu1 %v1268_v41  ;;  %1289 = vpow2.f32 %v994_v36  ;;  %v993_v42 = vmul.f32 -1.442695, %v685_v34  ;;  %v684_v37 = vadd.f32 %v676_v35, %v1583_v10  ;;  %v817_v6 = vld [vmem:[%s1874_s4 + $0x18] sm:$0xff]  ;;  %v814_v63 = vld [vmem:[%s1874_s4] sm:$0xff] }
  0x70   :  { %1095 = vmatpush3.msra.mxu1 %v1268_v41  ;;  %1291 = vrcp.f32 %v543_v9  ;;  %v721_v47 = vadd.f32 1.0, %v1270_v1  ;;  %v675_v52 = vadd.f32 %v667_v22, %v658_v24 }
  0x71   :  { %v1272_v0 = vpop.eup %1271  ;;  %1293 = vpow2.f32 %v993_v42  ;;  %v992_v29 = vmul.f32 -1.442695, %v684_v37 }
  0x72   :  { %v1274_v56 = vpop.eup %1273  ;;  %1295 = vrcp.f32 %v721_v47  ;;  %v542_v13 = vadd.f32 1.0, %v1272_v0  ;;  %v683_v33 = vadd.f32 %v675_v52, %v1593_v23 }
  0x73   :  { %v1276_v48 = vpop.eup %1275  ;;  %1107 = vmatprep.subr.mxu0 %v1274_v56  ;;  %1297 = vpow2.f32 %v992_v29 }
  0x74   :  { %v1278_v32 = vpop.eup %1277  ;;  %1096 = vmatprep.subr.mxu1 %v1276_v48  ;;  %1108 = vmatpush3.msra.mxu0 %v1274_v56  ;;  %1299 = vrcp.f32 %v542_v13  ;;  %v991_v10 = vmul.f32 -1.442695, %v683_v33 }
  0x75   :  { %v1280_v40 = vpop.eup %1279  ;;  %1097 = vmatpush3.msra.mxu1 %v1276_v48  ;;  %v720_v62 = vadd.f32 1.0, %v1278_v32 }
  0x76   :  { %v1282_v20 = vpop.eup %1281  ;;  %1109 = vmatprep.subr.mxu0 %v1280_v40  ;;  %1301 = vpow2.f32 %v991_v10 }
  0x77   :  { %1110 = vmatpush3.msra.mxu0 %v1280_v40  ;;  %1303 = vrcp.f32 %v720_v62  ;;  %v541_v15 = vadd.f32 1.0, %v1282_v20 }
  0x79   :  { %v1284_v43 = vpop.eup %1283  ;;  %1305 = vrcp.f32 %v541_v15 }
  0x7a   :  { %v1286_v23 = vpop.eup %1285  ;;  %1098 = vmatprep.subr.mxu1 %v1284_v43 }
  0x7b   :  { %v1288_v53 = vpop.eup %1287  ;;  %1099 = vmatpush3.msra.mxu1 %v1284_v43  ;;  %1111 = vmatprep.subr.mxu0 %v1286_v23 }
  0x7c   :  { %v1290_v4 = vpop.eup %1289  ;;  %1101 = vmatmul.mubr.msk.f32.vlgmr.msra.gmra.mxu1 %vm210_vm0, %v1720_v25  ;;  %1112 = vmatpush3.msra.mxu0 %v1286_v23  ;;  %v719_v8 = vadd.f32 1.0, %v1288_v53 }
  0x7d   :  { %v1292_v38 = vpop.eup %1291  ;;  %1122 = vmatprep.subr.mxu1 %v1750_v18  ;;  %v718_v45 = vadd.f32 1.0, %v1290_v4  ;;  %1138 = vmatprep.mubr.msk.f32.mxu1 %vm210_vm0, %v1457_v27 }
  0x7e   :  { %v1294_v39 = vpop.eup %1293  ;;  %1113 = vmatprep.subr.mxu0 %v1292_v38  ;;  %1123 = vmatpush3.msra.mxu1 %v1750_v18  ;;  %1307 = vrcp.f32 %v719_v8  ;;  %v829_v18 = vld [vmem:[%s1874_s4 + $0x78] sm:$0xff] }
  0x7f   :  { %v1296_v46 = vpop.eup %1295  ;;  %1114 = vmatpush3.msra.mxu0 %v1292_v38  ;;  %1309 = vrcp.f32 %v718_v45  ;;  %v717_v44 = vadd.f32 1.0, %v1294_v39 }
  0x80   :  { %v1298_v49 = vpop.eup %1297  ;;  %1124 = vmatprep.subr.mxu1 %v1296_v46 }
  0x81   :  { %v1300_v30 = vpop.eup %1299  ;;  %1125 = vmatpush3.msra.mxu1 %v1296_v46  ;;  %1311 = vrcp.f32 %v717_v44  ;;  %v716_v50 = vadd.f32 1.0, %v1298_v49 }
  0x82   :  { %1115 = vmatprep.subr.mxu0 %v1300_v30 }
  0x83   :  { %v1302_v57 = vpop.eup %1301  ;;  %1116 = vmatpush3.msra.mxu0 %v1300_v30  ;;  %1313 = vrcp.f32 %v716_v50 }
  0x84   :  { %v1304_v27 = vpop.eup %1303  ;;  %v715_v51 = vadd.f32 1.0, %v1302_v57 }
  0x85   :  { %1126 = vmatprep.subr.mxu1 %v1304_v27 }
  0x86   :  { %v1306_v58 = vpop.eup %1305  ;;  %1127 = vmatpush3.msra.mxu1 %v1304_v27  ;;  %1315 = vrcp.f32 %v715_v51 }
  0x87   :  { %1117 = vmatprep.subr.mxu0 %v1306_v58 }
  0x88   :  { %1118 = vmatpush3.msra.mxu0 %v1306_v58 }
  0x89   :  { %1120 = vmatmul.mubr.msk.f32.vlgmr.msra.gmra.mxu0 %vm210_vm0, %v1720_v25  ;;  %1141 = vmatprep.subr.mxu0 %v829_v18 }
  0x8a   :  { %1142 = vmatpush3.msra.mxu0 %v829_v18 }
  0x8b   :  { %v1308_v54 = vpop.eup %1307  ;;  %1143 = vmatprep.subr.mxu0 %v828_v2 }
  0x8c   :  { %v1310_v55 = vpop.eup %1309  ;;  %1128 = vmatprep.subr.mxu1 %v1308_v54  ;;  %1144 = vmatpush3.msra.mxu0 %v828_v2 }
  0x8d   :  { %1129 = vmatpush3.msra.mxu1 %v1308_v54  ;;  %1145 = vmatprep.subr.mxu0 %v827_v59 }
  0x8e   :  { %v1312_v60 = vpop.eup %1311  ;;  %1130 = vmatprep.subr.mxu1 %v1310_v55  ;;  %1146 = vmatpush3.msra.mxu0 %v827_v59 }
  0x8f   :  { %1131 = vmatpush3.msra.mxu1 %v1310_v55  ;;  %1147 = vmatprep.subr.mxu0 %v826_v28 }
  0x90   :  { %v1314_v7 = vpop.eup %1313  ;;  %1132 = vmatprep.subr.mxu1 %v1312_v60  ;;  %1148 = vmatpush3.msra.mxu0 %v826_v28 }
  0x91   :  { %1133 = vmatpush3.msra.mxu1 %v1312_v60  ;;  %1149 = vmatprep.subr.mxu0 %v825_v61 }
  0x92   :  { %1134 = vmatprep.subr.mxu1 %v1314_v7  ;;  %1150 = vmatpush3.msra.mxu0 %v825_v61 }
  0x93   :  { %v1316_v11 = vpop.eup %1315  ;;  %1135 = vmatpush3.msra.mxu1 %v1314_v7  ;;  %1151 = vmatprep.subr.mxu0 %v824_v5 }
  0x94   :  { %1136 = vmatprep.subr.mxu1 %v1316_v11  ;;  %1152 = vmatpush3.msra.mxu0 %v824_v5 }
  0x95   :  { %1137 = vmatpush3.msra.mxu1 %v1316_v11  ;;  %1153 = vmatprep.subr.mxu0 %v823_v12 }
  0x96   :  { %1139 = vmatmul.mubr.msk.f32.vlgmr.msra.gmra.mxu1 %vm210_vm0, %v1720_v25  ;;  %1154 = vmatpush3.msra.mxu0 %v823_v12  ;;  %v818_v25 = vld [vmem:[%s1874_s4 + $0x20] sm:$0xff] }
  0x97   :  { %1155 = vmatprep.subr.mxu0 %v822_v14 }
  0x98   :  { %1156 = vmatpush3.msra.mxu0 %v822_v14 }
  0x99   :  { %1157 = vmatprep.subr.mxu0 %v821_v19 }
  0x9a   :  { %1158 = vmatpush3.msra.mxu0 %v821_v19 }
  0x9b   :  { %1159 = vmatprep.subr.mxu0 %v820_v16 }
  0x9c   :  { %1160 = vmatpush3.msra.mxu0 %v820_v16 }
  0x9d   :  { %1161 = vmatprep.subr.mxu0 %v819_v21 }
  0x9e   :  { %1162 = vmatpush3.msra.mxu0 %v819_v21 }
  0x9f   :  { %1163 = vmatprep.subr.mxu0 %v818_v25 }
  0xa0   :  { %1164 = vmatpush3.msra.mxu0 %v818_v25 }
  0xa1   :  { %1165 = vmatprep.subr.mxu0 %v817_v6 }
  0xa2   :  { %1166 = vmatpush3.msra.mxu0 %v817_v6 }
  0xa3   :  { %1167 = vmatprep.subr.mxu0 %v816_v17 }
  0xa4   :  { %1168 = vmatpush3.msra.mxu0 %v816_v17 }
  0xa5   :  { %1169 = vmatprep.subr.mxu0 %v815_v3 }
  0xa6   :  { %1170 = vmatpush3.msra.mxu0 %v815_v3 }
  0xa7   :  { %1171 = vmatprep.subr.mxu0 %v814_v63 }
  0xa8   :  { %1172 = vmatpush3.msra.mxu0 %v814_v63 }
 0x11e   :  { %v1083_v26 = vpop.f32.mrf.mxu1 }
 0x120   :  { %v283_v22 = vpop.f32.mrf.mxu1 }
 0x121   :  { %1173 = vmatprep.mubr.f32.mxu0 %v283_v22 }
 0x122   :  { %1174 = vmatmul.mubr.f32.vlgmr.msra.gmra.mxu0 %v1083_v26 }
 0x13c   :  { %v1102_v31 = vpop.f32.mrf.mxu1 }
 0x13e   :  { %v457_v36 = vpop.f32.mrf.mxu1 }
 0x13f   :  { %1176 = vmatprep.mubr.f32.mxu0 %v457_v36 }
 0x140   :  { %1177 = vmatmul.mubr.f32.gmra.mxu0 %v1102_v31 }
 0x149   :  { %v1121_v34 = vpop.f32.mrf.mxu0 }
 0x14b   :  { %v631_v35 = vpop.f32.mrf.mxu0 }
 0x14c   :  { %1179 = vmatprep.mubr.f32.mxu0 %v631_v35 }
 0x14d   :  { %1180 = vmatmul.mubr.f32.gmra.mxu0 %v1121_v34 }
 0x156   :  { %v1140_v41 = vpop.f32.mrf.mxu1 }
 0x158   :  { %v805_v9 = vpop.f32.mrf.mxu1 }
 0x159   :  { %1182 = vmatprep.mubr.f32.mxu0 %v805_v9 }
 0x15a   :  { %1183 = vmatmul.mubr.f32.gmra.mxu0 %v1140_v41 }
 0x1e2   :  { %v1175_v24 = vpop.f32.mrf.mxu0 }
 0x1e3   :  { %937 = vst.msk [vmem:[%s1875_s5 + $0x8] sm:$0xff] %vm935_vm1, %v1175_v24 }
 0x1e4   :  { %v896_v1 = vpop.f32.mrf.mxu0 }
 0x1e5   :  { %936 = vst.msk [vmem:[%s1875_s5] sm:$0xff] %vm935_vm1, %v896_v1 }
 0x200   :  { %v1178_v42 = vpop.f32.mrf.mxu0 }
 0x201   :  { %939 = vst.msk [vmem:[%s1875_s5 + $0x18] sm:$0xff] %vm935_vm1, %v1178_v42 }
 0x202   :  { %v906_v37 = vpop.f32.mrf.mxu0 }
 0x203   :  { %938 = vst.msk [vmem:[%s1875_s5 + $0x10] sm:$0xff] %vm935_vm1, %v906_v37 }
 0x20d   :  { %v1181_v47 = vpop.f32.mrf.mxu0 }
 0x20e   :  { %941 = vst.msk [vmem:[%s1875_s5 + $0x28] sm:$0xff] %vm935_vm1, %v1181_v47 }
 0x20f   :  { %v916_v52 = vpop.f32.mrf.mxu0 }
 0x210   :  { %940 = vst.msk [vmem:[%s1875_s5 + $0x20] sm:$0xff] %vm935_vm1, %v916_v52 }
 0x21a   :  { %v1184_v0 = vpop.f32.mrf.mxu0 }
 0x21b   :  { %943 = vst.msk [vmem:[%s1875_s5 + $0x38] sm:$0xff] %vm935_vm1, %v1184_v0 }
 0x21c   :  { %v926_v29 = vpop.f32.mrf.mxu0 }
 0x21d   :  { %942 = vst.msk [vmem:[%s1875_s5 + $0x30] sm:$0xff] %vm935_vm1, %v926_v29 }
 0x21e   :  { %948 = vsyncpa [#allocation3], 1 }
 0x21f   :  { %949 = vsyncpa [#allocation4], 1 }

</bundles_post_ra>
